<compile_context>
chip_gen: v5e
topology: v5e:2x2
jax: 0.10.0
libtpu: 0.0.40
codegen_flags: <defaults>
</compile_context>

<pallas_src>
import functools
import math

import jax
import jax.numpy as jnp
from jax.experimental import pallas as pl
from jax.experimental.pallas import tpu as pltpu


def _round_up(v, m):
    return (v + m - 1) // m * m


def _vmem_caps():
    """(tile-sizing budget, vmem_limit_bytes) from physical per-core VMEM."""
    try:
        cap = int(pltpu.get_tpu_info().vmem_capacity_bytes)
    except Exception:
        cap = 64 * 1024 * 1024  # conservative default: v7x per-TC VMEM
    tile_budget = min(cap // 2, 48 * 1024 * 1024)
    vmem_limit = min(cap * 3 // 4, 96 * 1024 * 1024)
    return tile_budget, vmem_limit


def _pick_tiles(n, f, h, x_item, w_item, out_item, budget):
    """Pick (tm, tn).

    tn: output-column tile -- a multiple of 128 (lane-dense stores, bounded
        W_t VMEM footprint on v7x) or the full H (full-dim exemption).
    tm: row tile -- as large as the VMEM budget allows (kernel is HBM-bound),
        counting double-buffered x/W/out tiles plus the f32 accumulator.
    """
    if h % 128 == 0:
        tn = min(h, 512)
    else:
        tn = h  # full-dim block; exempt from the 128-lane rule

    const_bytes = 2 * f * tn * w_item + 2 * tn * 4          # W_t tile (x2 buf) + bias
    per_row = (2 * f * x_item                                # x tile (x2 buf)
               + 2 * tn * out_item                           # out tile (x2 buf)
               + 2 * tn * 4)                                 # f32 acc + ReLU temp
    avail = max(budget - const_bytes - (2 << 20), 8 * per_row)
    tm = int(avail // per_row)
    tm = max(8, min(tm, 1024))
    tm = (tm // 128) * 128 if tm >= 128 else _round_up(tm, 8)

    n8 = _round_up(n, 8)
    if tm >= n8:
        tm = n8  # one row block covers all rows
        # Sizable single-step problems: split along H so both v7x TensorCores
        # get work (harmless single extra cheap step on single-TC v5e/v6e).
        if n8 * h >= 512 * 512 and tn == h and h % 256 == 0:
            tn = h // 2
    return tm, tn


def _mlp_kernel(x_ref, wt_ref, b_ref, o_ref, *, compute_dtype):
    # x_ref: (tm, F)   wt_ref: (F, tn)   b_ref: (1, tn)   o_ref: (tm, tn)
    x = x_ref[...]
    if x.dtype != compute_dtype:
        x = x.astype(compute_dtype)          # in-VMEM cast (VPU), no HBM cost
    acc = jnp.dot(x, wt_ref[...], preferred_element_type=jnp.float32)
    acc = acc + b_ref[...].astype(jnp.float32)
    o_ref[...] = jnp.maximum(acc, 0.0).astype(o_ref.dtype)


def prepare_mlp_params(w, b, *, param_dtype=jnp.bfloat16):
    """One-time parameter prep (hoist out of the per-call forward path).

    Transposes the PyTorch-layout Linear weight [H, F] -> W_t [F, H] so the
    kernel feeds the MXU directly, and casts it to the matmul compute dtype
    (bf16 default: half the HBM/VMEM weight bytes, native MXU dtype on every
    generation).  Bias is kept in f32 and added after the f32 accumulate.
    Cache the returned (wt, b2) like parameters and reuse across calls.
    """
    wt = jnp.asarray(w).T.astype(param_dtype)
    b2 = jnp.asarray(b).reshape(1, -1).astype(jnp.float32)
    return wt, b2


def mlp_forward(x, wt, b2, *, tm=None, tn=None):
    """relu(x @ W.T + b) == relu(x @ wt + b) as one fused Pallas TPU kernel.

    x : [N, F] (f32 or bf16)      wt : [F, H] from prepare_mlp_params
    b2: [1, H] float32            returns [N, H] in x.dtype
    """
    N, F = x.shape
    F2, H = wt.shape
    assert F == F2, "feature dims must match"
    assert b2.shape == (1, H)

    x_item = jnp.dtype(x.dtype).itemsize
    w_item = jnp.dtype(wt.dtype).itemsize
    out_dtype = x.dtype
    out_item = jnp.dtype(out_dtype).itemsize

    tile_budget, vmem_limit = _vmem_caps()
    auto_tm, auto_tn = _pick_tiles(N, F, H, x_item, w_item, out_item, tile_budget)
    if tm is None:
        tm = auto_tm
    if tn is None:
        tn = auto_tn

    grid = (pl.cdiv(N, tm), pl.cdiv(H, tn))

    cost = pl.CostEstimate(
        flops=2 * N * F * H,
        transcendentals=0,
        bytes_accessed=(N * F * x_item + F * H * w_item + H * 4
                        + N * H * out_item),
    )

    kernel = functools.partial(_mlp_kernel, compute_dtype=wt.dtype)

    return pl.pallas_call(
        kernel,
        out_shape=jax.ShapeDtypeStruct((N, H), out_dtype),
        grid_spec=pltpu.PrefetchScalarGridSpec(
            num_scalar_prefetch=0,
            grid=grid,
            in_specs=[
                pl.BlockSpec((tm, F), lambda i, j: (i, 0)),   # x row tile (true F)
                pl.BlockSpec((F, tn), lambda i, j: (0, j)),   # W_t column tile
                pl.BlockSpec((1, tn), lambda i, j: (0, j)),   # bias tile
            ],
            out_specs=pl.BlockSpec((tm, tn), lambda i, j: (i, j)),
        ),
        compiler_params=pltpu.CompilerParams(
            dimension_semantics=("parallel", "parallel"),
            vmem_limit_bytes=vmem_limit,
        ),
        cost_estimate=cost,
    )(x, wt, b2)


def xavier_uniform(key, shape, dtype=jnp.float32):
    # torch.nn.init.xavier_uniform_ for a Linear weight [out, in]:
    # bound = sqrt(6 / (fan_in + fan_out))
    fan_out, fan_in = shape
    bound = math.sqrt(6.0 / (fan_in + fan_out))
    return jax.random.uniform(key, shape, dtype, minval=-bound, maxval=bound)


if __name__ == "__main__":
    key = jax.random.PRNGKey(0)
    k_x, k_w = jax.random.split(key)

    # Small shapes consistent with the module: num_features=32, hidden_channels=64.
    N, num_features, hidden_channels = 16, 32, 64

    x = jax.random.normal(k_x, (N, num_features), dtype=jnp.float32)
    w = xavier_uniform(k_w, (hidden_channels, num_features))  # like init_emb()
    b = jnp.zeros((hidden_channels,), dtype=jnp.float32)      # bias filled with 0

    ref = jnp.maximum(x @ w.T + b, 0.0)

    # 1) f32-parameter path: tight check of the kernel math itself.
    wt32, b2 = prepare_mlp_params(w, b, param_dtype=jnp.float32)
    out32 = jax.block_until_ready(mlp_forward(x, wt32, b2))
    assert out32.shape == (N, hidden_channels)
    assert jnp.allclose(out32, ref, atol=1e-5, rtol=1e-5)

    # 2) Default bf16-parameter path (production config: half the weight bytes).
    wt16, _ = prepare_mlp_params(w, b)  # bf16 weights, prepared once
    out16 = jax.block_until_ready(mlp_forward(x, wt16, b2))
    ref16 = jnp.maximum(
        jnp.dot(x.astype(jnp.bfloat16), wt16,
                preferred_element_type=jnp.float32) + b, 0.0)
    assert out16.shape == (N, hidden_channels)
    assert jnp.allclose(out16, ref16, atol=1e-3, rtol=1e-3)
    assert jnp.allclose(out16, ref, atol=5e-2, rtol=5e-2)

    print("KERNEL_OK")
</pallas_src>

<mosaic_0001>
module attributes {stable_mosaic.version = 11 : i64} {
  func.func @_mlp_kernel(%arg0: i32, %arg1: i32, %arg2: memref<16x32xf32, #tpu.memory_space<vmem>>, %arg3: memref<32x64xf32, #tpu.memory_space<vmem>>, %arg4: memref<1x64xf32, #tpu.memory_space<vmem>>, %arg5: memref<16x64xf32, #tpu.memory_space<vmem>>) attributes {dimension_semantics = [#tpu.dimension_semantics<parallel>, #tpu.dimension_semantics<parallel>], iteration_bounds = array<i64: 1, 1>, scalar_prefetch = 0 : i64, scratch_operands = 0 : i64, tpu.core_type = #tpu.core_type<tc>, window_params = [{transform_indices = @transform_0, window_bounds = array<i64: 16, 32>}, {transform_indices = @transform_1, window_bounds = array<i64: 32, 64>}, {transform_indices = @transform_2, window_bounds = array<i64: 1, 64>}, {transform_indices = @transform_3, window_bounds = array<i64: 16, 64>}]} {
    %c0 = arith.constant 0 : index
    %c0_0 = arith.constant 0 : index
    %0 = vector.load %arg2[%c0, %c0_0] : memref<16x32xf32, #tpu.memory_space<vmem>>, vector<16x32xf32>
    %c0_1 = arith.constant 0 : index
    %c0_2 = arith.constant 0 : index
    %1 = vector.load %arg3[%c0_1, %c0_2] : memref<32x64xf32, #tpu.memory_space<vmem>>, vector<32x64xf32>
    %cst = arith.constant dense<0.000000e+00> : vector<16x64xf32>
    %2 = tpu.matmul %0, %1, %cst {dimension_numbers = #tpu.dot_dimension_numbers<[1], [0], [0], [1], [0, 0, 1, 1], [], []>} : vector<16x32xf32>, vector<32x64xf32>, vector<16x64xf32> -> vector<16x64xf32>
    %c0_3 = arith.constant 0 : index
    %c0_4 = arith.constant 0 : index
    %3 = vector.load %arg4[%c0_3, %c0_4] : memref<1x64xf32, #tpu.memory_space<vmem>>, vector<1x64xf32>
    %4 = vector.broadcast %3 : vector<1x64xf32> to vector<16x64xf32>
    %5 = arith.addf %2, %4 : vector<16x64xf32>
    %cst_5 = arith.constant 0.000000e+00 : f32
    %6 = vector.broadcast %cst_5 : f32 to vector<16x64xf32>
    %7 = arith.maximumf %5, %6 : vector<16x64xf32>
    %c0_6 = arith.constant 0 : index
    %c0_7 = arith.constant 0 : index
    %8 = vector.load %arg5[%c0_6, %c0_7] : memref<16x64xf32, #tpu.memory_space<vmem>>, vector<16x64xf32>
    tpu.vector_store %arg5[%c0_6, %c0_7], %7 {strides = array<i32>} : memref<16x64xf32, #tpu.memory_space<vmem>>, vector<16x64xf32>,
    return
  }
  func.func @transform_0(%arg0: i32, %arg1: i32) -> (i32, i32) {
    %c0_i32 = arith.constant 0 : i32
    %c0_i32_0 = arith.constant 0 : i32
    return %arg0, %c0_i32 : i32, i32
  }
  func.func @transform_1(%arg0: i32, %arg1: i32) -> (i32, i32) {
    %c0_i32 = arith.constant 0 : i32
    %c0_i32_0 = arith.constant 0 : i32
    return %c0_i32, %arg1 : i32, i32
  }
  func.func @transform_2(%arg0: i32, %arg1: i32) -> (i32, i32) {
    %c0_i32 = arith.constant 0 : i32
    %c0_i32_0 = arith.constant 0 : i32
    return %c0_i32, %arg1 : i32, i32
  }
  func.func @transform_3(%arg0: i32, %arg1: i32) -> (i32, i32) {
    %c0_i32 = arith.constant 0 : i32
    return %arg0, %arg1 : i32, i32
  }
}

</mosaic_0001>

<bundles_post_ra>
// kernel: tpu_custom_call.1
= control target key start
LH: loop header
LB: loop body
LE: loop exit
PB: predicated region body
PF: predicated region fallthrough
CT: control target
= control target key end

     0   :  { %8 = vsyncpa [#allocation3], 0  ;;  %s248_s0 = inlined_call_operand.hbm [shape: f32[16,32], index: 0, kind: input, shape index: {}]   ;;  %s249_s1 = inlined_call_operand.hbm [shape: f32[32,64], index: 1, kind: input, shape index: {}]   ;;  %s250_s2 = inlined_call_operand.vmem [shape: f32[1,64], index: 2, kind: input, shape index: {}]   ;;  %s251_s3 = inlined_call_operand.hbm [shape: f32[16,64], index: 3, kind: output, shape index: {}]  }
   0x1   :  { %9 = vsyncpa [#allocation6], 0 }
   0x2   :  { %10 = vsyncpa [#allocation4], 0  ;;  %s15_s14 = sshll.u32 %s248_s0, 4  ;;  %s202_s15 = smov [#allocation2]   ;;  %s16_s14 = int_to_ptr.hbm [resolvable:$true] %s15_s14 }
   0x3   :  { %s17_s16 = sshll.u32 %s202_s15, 4  ;;  %s28_s19 = sshll.u32 %s249_s1, 4  ;;  %s18_s16 = int_to_ptr.vmem [resolvable:$true] %s17_s16  ;;  %s29_s19 = int_to_ptr.hbm [resolvable:$true] %s28_s19 }
   0x4   :  { %s203_s20 = smov 128   ;;  %s204_s21 = smov 8  }
   0x5   :  { %23 = dma.hbm_to_vmem [thread:$0]  %s16_s14, 256, %s18_s16, [#allocation3], %s203_s20, %s203_s20, %s204_s21  }
   0x6   :  { %s205_s22 = smov [#allocation5]  }
   0x7   :  { %s30_s23 = sshll.u32 %s205_s22, 4  ;;  %s31_s23 = int_to_ptr.vmem [resolvable:$true] %s30_s23 }
   0x8   :  { %36 = dma.hbm_to_vmem [thread:$0]  %s29_s19, 512, %s31_s23, [#allocation6], %s203_s20, %s203_s20, %s204_s21  }
   0x9   :  { %196 = dma.done.wait [#allocation3], 256  }
   0xa   :  { %197 = vsyncadd [#allocation3], 4294967040 }
   0xb   :  { %198 = dma.done.wait [#allocation6], 512  }
   0xc   :  { %199 = vsyncadd [#allocation6], 4294966784  ;;  %v52_v0 = vld [vmem:[#allocation5 + $0x18] sm:$0xff]  ;;  %v51_v1 = vld [vmem:[#allocation5 + $0x10] sm:$0xff]  ;;  %vm57_vm0 = vcmask 261120   ;;  %s206_s24 = smov [#allocation7]  }
   0xd   :  { %76 = vmatpush.msra.mxu0 %v52_v0  ;;  %114 = vmatpush.msra.mxu1 %v52_v0  ;;  %v50_v2 = vld [vmem:[#allocation5 + $0x8] sm:$0xff]  ;;  %v49_v3 = vld [vmem:[#allocation5] sm:$0xff]  ;;  %v47_v4 = vld [vmem:[#allocation2] sm:$0xff]  ;;  %s96_s25 = sshll.u32 %s206_s24, 4  ;;  %s98_s28 = sshll.u32 %s251_s3, 4  ;;  %vm89_vm1 = vcmask 523264   ;;  %s97_s25 = int_to_ptr.vmem [resolvable:$true] %s96_s25  ;;  %s99_s28 = int_to_ptr.hbm [resolvable:$true] %s98_s28 }
   0xe   :  { %v48_v5 = vld [vmem:[#allocation2 + $0x8] sm:$0xff]  ;;  %v123_v6 = vld [vmem:[%s250_s2] ss:$0 sm:$0xff] }
   0xf   :  { %77 = vmatpush.msra.mxu0 %v51_v1  ;;  %115 = vmatpush.msra.mxu1 %v51_v1 }
  0x11   :  { %78 = vmatpush.msra.mxu0 %v50_v2  ;;  %116 = vmatpush.msra.mxu1 %v50_v2 }
  0x13   :  { %79 = vmatpush.msra.mxu0 %v49_v3  ;;  %117 = vmatpush.msra.mxu1 %v49_v3 }
  0x14   :  { %112 = vmatmul.msk.f32.vlgmr.msra.gmra.mxu0 %vm57_vm0, %v47_v4  ;;  %113 = vmatmul.msk.f32.vlgmr.msra.gmra.mxu1 %vm57_vm0, %v48_v5 }
  0x91   :  { %v81_v7 = vpop.f32.mrf.mxu0  ;;  %v84_v8 = vpop.f32.mrf.mxu1 }
  0x92   :  { %v82_v9 = vadd.f32 %v123_v6, %v81_v7  ;;  %v85_v10 = vadd.f32 %v123_v6, %v84_v8 }
  0x94   :  { %v87_v11 = vmax.f32 %v82_v9, 0.0  ;;  %v88_v12 = vmax.f32 %v85_v10, 0.0 }
  0x96   :  { %90 = vst.msk [vmem:[#allocation7] sm:$0xff] %vm89_vm1, %v87_v11 }
  0x97   :  { %91 = vst.msk [vmem:[#allocation7 + $0x8] sm:$0xff] %vm89_vm1, %v88_v12 }
  0x98   :  { %104 = dma.vmem_to_hbm [thread:$0]  %s97_s25, 256, %s99_s28, [#allocation4], %s203_s20, %s203_s20, %s204_s21  }
  0x99   :  { %200 = dma.done.wait [#allocation4], 256  }
  0x9a   :  { %201 = vsyncadd [#allocation4], 4294967040 }
  0x9b   :  { %109 = vsyncpa [#allocation3], 1 }
  0x9c   :  { %110 = vsyncpa [#allocation6], 1 }
  0x9d   :  { %111 = vsyncpa [#allocation4], 1 }

</bundles_post_ra>
